<compile_context>
chip_gen: v7x
topology: tpu7x:2x2x1
jax: 0.10.0
libtpu: 0.0.40
codegen_flags: <defaults>
</compile_context>

<pallas_src>
import math

import jax
import jax.numpy as jnp
from jax.experimental import pallas as pl
from jax.experimental.pallas import tpu as pltpu


# ---------------------------------------------------------------------------
# Bilinear interpolation helpers (PyTorch F.interpolate, mode='bilinear',
# align_corners=False): gather form for the reference, dense-matrix form for
# the kernel (so the upsampled g never round-trips HBM).
# ---------------------------------------------------------------------------
def _interp_coords(out_size, in_size, scale):
    i = jnp.arange(out_size, dtype=jnp.float32)
    src = jnp.clip((i + 0.5) / scale - 0.5, 0.0, in_size - 1.0)
    lo = jnp.floor(src).astype(jnp.int32)
    hi = jnp.minimum(lo + 1, in_size - 1)
    w = src - lo.astype(jnp.float32)
    return lo, hi, w


def bilinear_upsample(x, scale):
    """Gather-based reference upsample: (N, C, H, W) -> (N, C, H*s, W*s)."""
    N, C, H, W = x.shape
    r0, r1, rw = _interp_coords(H * scale, H, scale)
    c0, c1, cw = _interp_coords(W * scale, W, scale)
    x00 = x[:, :, r0[:, None], c0[None, :]]
    x01 = x[:, :, r0[:, None], c1[None, :]]
    x10 = x[:, :, r1[:, None], c0[None, :]]
    x11 = x[:, :, r1[:, None], c1[None, :]]
    rw_ = rw[None, None, :, None]
    cw_ = cw[None, None, None, :]
    top = x00 * (1.0 - cw_) + x01 * cw_
    bot = x10 * (1.0 - cw_) + x11 * cw_
    return top * (1.0 - rw_) + bot * rw_


def _interp_matrix(out_size, in_size, scale):
    lo, hi, w = _interp_coords(out_size, in_size, scale)
    rows = jnp.arange(out_size)
    m = jnp.zeros((out_size, in_size), jnp.float32)
    m = m.at[rows, lo].add(1.0 - w)
    m = m.at[rows, hi].add(w)
    return m  # (out, in); rows sum to 1


def _bilinear_matrix(Hi, Wi, Ho, Wo, scale):
    """U such that (A, Hi*Wi) @ U == bilinear upsample to (A, Ho*Wo)."""
    ur = _interp_matrix(Ho, Hi, scale)          # (Ho, Hi)
    uc = _interp_matrix(Wo, Wi, scale)          # (Wo, Wi)
    # U[h*Wi + w, ho*Wo + wo] = ur[ho, h] * uc[wo, w]
    u = jnp.einsum("ab,cd->bdac", ur, uc)       # (Hi, Wi, Ho, Wo)
    return u.reshape(Hi * Wi, Ho * Wo)          # (Pg, P) f32


# ---------------------------------------------------------------------------
# Pallas kernel: one grid step handles a block of `batch_block` batches.
#   l_ref  : (BN, Cl, P)   bf16 local features, P lane-dense
#   g_ref  : (BN, Cg, Pg)  bf16 global features (small, pre-upsample)
#   u_ref  : (Pg, P)       f32 bilinear interpolation matrix (only up_factor>1)
#   wl_ref : (A, Cl)       bf16 W_l weight
#   wg_ref : (A, Cg)       bf16 W_g weight
#   pw_ref : (A, 1)        f32 phi weight (column)
#   pb_ref : (1, 1)        f32 phi bias (SMEM scalar)
#   a_ref  : (BN, P)       bf16 attention map (lane-dense rows)
#   o_ref  : (BN, Cl)      f32 pooled output
# ---------------------------------------------------------------------------
def _make_kernel(batch_block: int, normalize_attn: bool, has_upsample: bool):
    def compute(l_ref, g_ref, u_ref, wl_ref, wg_ref, pw_ref, pb_ref, a_ref, o_ref):
        wl = wl_ref[...]                       # (A, Cl) bf16
        wg = wg_ref[...]                       # (A, Cg) bf16
        pw = pw_ref[...]                       # (A, 1)  f32
        bias = pb_ref[0, 0]                    # scalar (SMEM)
        inv_p = 1.0 / float(a_ref.shape[-1])

        def one_batch(b, carry):
            l = l_ref[b]                       # (Cl, P)  bf16
            g = g_ref[b]                       # (Cg, Pg) bf16

            # 1x1 convs as channel-mixing matmuls: bf16 operands, f32 accum
            # (exact for bf16-rounded inputs/weights).
            zl = jnp.dot(wl, l, preferred_element_type=jnp.float32)      # (A, P)
            zg = jnp.dot(wg, g, preferred_element_type=jnp.float32)      # (A, Pg)
            if has_upsample:
                # Bilinear upsample of the *projected* g (commutes with the
                # 1x1 conv) as a small exact f32 matmul -- no HBM round trip.
                zg = jnp.dot(zg, u_ref[...],
                             preferred_element_type=jnp.float32,
                             precision=jax.lax.Precision.HIGHEST)        # (A, P)
            z = jnp.maximum(zl + zg, 0.0)                                # relu

            # phi 1x1 conv: VPU broadcast-mul + sublane reduce over A (exact
            # f32; an MXU matmul with N=1 would waste 127/128 of the array).
            c = jnp.sum(z * pw, axis=0, keepdims=True) + bias            # (1, P)

            lf = l.astype(jnp.float32)
            if normalize_attn:
                m = jnp.max(c, axis=1, keepdims=True)
                e = jnp.exp(c - m)
                s = jnp.sum(e, axis=1, keepdims=True)
                a = e * pl.reciprocal(s, approx=True)                    # softmax
                out = jnp.sum(a * lf, axis=1)                            # (Cl,)
            else:
                a = jax.nn.sigmoid(c)
                out = jnp.sum(a * lf, axis=1) * inv_p                    # avg pool

            a_ref[pl.ds(b, 1), :] = a.astype(a_ref.dtype)                # (1, P)
            o_ref[pl.ds(b, 1), :] = out[None, :].astype(o_ref.dtype)     # (1, Cl)
            return carry

        jax.lax.fori_loop(0, batch_block, one_batch, 0,
                          unroll=min(4, max(1, batch_block)))

    if has_upsample:
        def kernel(l_ref, g_ref, u_ref, wl_ref, wg_ref, pw_ref, pb_ref, a_ref, o_ref):
            compute(l_ref, g_ref, u_ref, wl_ref, wg_ref, pw_ref, pb_ref, a_ref, o_ref)
    else:
        def kernel(l_ref, g_ref, wl_ref, wg_ref, pw_ref, pb_ref, a_ref, o_ref):
            compute(l_ref, g_ref, None, wl_ref, wg_ref, pw_ref, pb_ref, a_ref, o_ref)
    return kernel


# ---------------------------------------------------------------------------
# VMEM budget / batch-block selection
# ---------------------------------------------------------------------------
def _round_up(x, m):
    return -(-x // m) * m


def _vmem_capacity_bytes(default=64 * 1024 * 1024):
    try:
        info = pltpu.get_tpu_info()
        return int(getattr(info, "vmem_capacity_bytes", default))
    except Exception:
        return default


def _pick_batch_block(n, per_batch_bytes, fixed_bytes, budget_bytes):
    """Largest legal divisor of n fitting the VMEM budget.

    Legality: the 2-D output blocks (bn, P)/(bn, Cl) need bn % 16 == 0 (safe for
    both f32 and packed bf16 sublane tiling) or bn == n.  When the largest
    fitting block would collapse the grid to one step, prefer a smaller fitting
    block so >=2 grid steps exist (megacore sharding + DMA/compute overlap).
    """
    cands = [d for d in range(1, n + 1) if n % d == 0 and (d % 16 == 0 or d == n)]
    fit = [d for d in cands if fixed_bytes + d * per_batch_bytes <= budget_bytes]
    if not fit:
        fit = [min(cands)]
    bn = max(fit)
    if bn == n and n > 1:
        smaller = [d for d in fit if d < n]
        if smaller:
            bn = max(smaller)
    return bn


# ---------------------------------------------------------------------------
# Wrapper: NCHW in / (a: (N,1,H,W) attention map, output: (N, Cl)) out
# ---------------------------------------------------------------------------
def attention_block(l, g, params, *, up_factor=1, normalize_attn=True):
    wl, wg, phiw, phib = params
    N, Cl, H, W = l.shape
    Cg, Hs, Ws = g.shape[1], g.shape[2], g.shape[3]
    A = wl.shape[0]
    P = H * W
    Pg = Hs * Ws
    has_up = up_factor > 1
    if has_up:
        assert Hs * up_factor == H and Ws * up_factor == W

    # P-minor (lane-dense) layout: a plain reshape of NCHW (no transpose, no
    # extra HBM pass).  bf16 across the kernel boundary (mem-bound kernel).
    l_flat = l.reshape(N, Cl, P).astype(jnp.bfloat16)
    g_flat = g.reshape(N, Cg, Pg).astype(jnp.bfloat16)
    wl_b = wl.astype(jnp.bfloat16)
    wg_b = wg.astype(jnp.bfloat16)
    pw = phiw.astype(jnp.float32).reshape(A, 1)
    pb = phib.astype(jnp.float32).reshape(1, 1)

    # VMEM budget: derive from the chip (128 MiB v5e/v6e, 64 MiB v7x).
    vmem_cap = _vmem_capacity_bytes()
    vmem_limit = min((vmem_cap * 3) // 4, 96 * 1024 * 1024)
    budget = max(vmem_limit - 8 * 1024 * 1024, 4 * 1024 * 1024)

    p_pad = _round_up(P, 128)
    pg_pad = _round_up(Pg, 128)
    cl_pad = _round_up(Cl, 16)   # bf16 packs 16 sublanes / vreg
    cg_pad = _round_up(Cg, 16)
    a_pad = _round_up(A, 8)
    unroll = 4
    # Double-buffered inputs + outputs per batch (bf16 inputs, bf16 `a` row,
    # f32 pooled row padded to one lane tile).
    per_batch = 2 * (cl_pad * p_pad * 2 + cg_pad * pg_pad * 2 + p_pad * 2 + 128 * 4)
    # Weights, optional interpolation matrix, unrolled-loop f32 intermediates.
    fixed = (a_pad * 128 * 2 * 2 + a_pad * 128 * 4
             + (pg_pad * p_pad * 4 if has_up else 0)
             + unroll * 3 * a_pad * p_pad * 4)
    bn = _pick_batch_block(N, per_batch, fixed, budget)
    grid = (N // bn,)

    kernel = _make_kernel(bn, normalize_attn, has_up)

    in_specs = [
        pl.BlockSpec((bn, Cl, P), lambda i: (i, 0, 0)),
        pl.BlockSpec((bn, Cg, Pg), lambda i: (i, 0, 0)),
    ]
    args = [l_flat, g_flat]
    if has_up:
        u_mat = _bilinear_matrix(Hs, Ws, H, W, up_factor)   # (Pg, P) f32
        in_specs.append(pl.BlockSpec((Pg, P), lambda i: (0, 0)))
        args.append(u_mat)
    in_specs += [
        # Weights: constant index_map -> DMA'd once, stay VMEM-resident.
        pl.BlockSpec((A, Cl), lambda i: (0, 0)),
        pl.BlockSpec((A, Cg), lambda i: (0, 0)),
        pl.BlockSpec((A, 1), lambda i: (0, 0)),
        # phi bias: single scalar in SMEM (no padded VMEM tile).
        pl.BlockSpec(memory_space=pltpu.MemorySpace.SMEM),
    ]
    args += [wl_b, wg_b, pw, pb]

    a_flat, out = pl.pallas_call(
        kernel,
        out_shape=(
            jax.ShapeDtypeStruct((N, P), jnp.bfloat16),   # attention map (lane-dense)
            jax.ShapeDtypeStruct((N, Cl), jnp.float32),   # pooled output
        ),
        grid=grid,
        in_specs=in_specs,
        out_specs=(
            pl.BlockSpec((bn, P), lambda i: (i, 0)),
            pl.BlockSpec((bn, Cl), lambda i: (i, 0)),
        ),
        compiler_params=pltpu.CompilerParams(
            dimension_semantics=("parallel",),            # shards across TCs on v7x
            vmem_limit_bytes=int(vmem_limit),
        ),
    )(*args)

    a = a_flat.reshape(N, 1, H, W)      # same flattening order as c.view(N, 1, -1)
    return a, out


# ---------------------------------------------------------------------------
# Pure-JAX reference (mirrors the PyTorch forward exactly, NCHW, f32)
# ---------------------------------------------------------------------------
def reference(l, g, params, *, up_factor=1, normalize_attn=True):
    wl, wg, phiw, phib = params
    N, Cl, H, W = l.shape
    l_ = jnp.einsum("nchw,ac->nahw", l, wl)
    g_ = jnp.einsum("nchw,ac->nahw", g, wg)
    if up_factor > 1:
        g_ = bilinear_upsample(g_, up_factor)
    z = jax.nn.relu(l_ + g_)
    # phi 1x1 conv as elementwise mul + reduce (keeps the reference exact f32).
    c = jnp.sum(z * phiw[:, 0][None, :, None, None], axis=1, keepdims=True) + phib[0, 0]
    if normalize_attn:
        a = jax.nn.softmax(c.reshape(N, 1, -1), axis=2).reshape(N, 1, H, W)
    else:
        a = jax.nn.sigmoid(c)
    f = a * l
    if normalize_attn:
        output = f.reshape(N, Cl, -1).sum(axis=2)
    else:
        output = f.mean(axis=(2, 3))
    return a, output


def init_params(key, in_features_l, in_features_g, attn_features):
    # PyTorch Conv2d default init: uniform(-1/sqrt(fan_in), 1/sqrt(fan_in)).
    k1, k2, k3, k4 = jax.random.split(key, 4)

    def u(k, fan_in, shape):
        b = 1.0 / math.sqrt(fan_in)
        return jax.random.uniform(k, shape, jnp.float32, -b, b)

    wl = u(k1, in_features_l, (attn_features, in_features_l))   # (A, Cl)
    wg = u(k2, in_features_g, (attn_features, in_features_g))   # (A, Cg)
    phiw = u(k3, attn_features, (attn_features, 1))             # (A, 1)
    phib = u(k4, attn_features, (1, 1))
    return wl, wg, phiw, phib


if __name__ == "__main__":
    key = jax.random.PRNGKey(0)
    kp, kl, kg1, kg2 = jax.random.split(key, 4)

    N, Cl, Cg, A = 2, 4, 6, 32
    H = W = 16

    def bf16_round(x):
        # Round data/weights through bf16 so the kernel's bf16 I/O is lossless
        # and the f32 reference sees the exact same values.
        return x.astype(jnp.bfloat16).astype(jnp.float32)

    wl, wg, phiw, phib = init_params(kp, Cl, Cg, A)
    params = (bf16_round(wl), bf16_round(wg), phiw, phib)

    l = bf16_round(jax.random.normal(kl, (N, Cl, H, W), jnp.float32))
    g_same = bf16_round(jax.random.normal(kg1, (N, Cg, H, W), jnp.float32))             # up_factor = 1
    g_small = bf16_round(jax.random.normal(kg2, (N, Cg, H // 2, W // 2), jnp.float32))  # up_factor = 2

    # Case 1: up_factor=1, normalize_attn=True (softmax path)
    a1, o1 = attention_block(l, g_same, params, up_factor=1, normalize_attn=True)
    a1 = jax.block_until_ready(a1)
    o1 = jax.block_until_ready(o1)
    a1_ref, o1_ref = reference(l, g_same, params, up_factor=1, normalize_attn=True)
    assert a1.shape == (N, 1, H, W) and o1.shape == (N, Cl)
    assert jnp.allclose(a1.astype(jnp.float32), a1_ref, atol=2e-3, rtol=2e-2)
    assert jnp.allclose(o1, o1_ref, atol=5e-3, rtol=1e-2)

    # Case 2: up_factor=2, normalize_attn=False (sigmoid + adaptive avg pool path)
    a2, o2 = attention_block(l, g_small, params, up_factor=2, normalize_attn=False)
    a2 = jax.block_until_ready(a2)
    o2 = jax.block_until_ready(o2)
    a2_ref, o2_ref = reference(l, g_small, params, up_factor=2, normalize_attn=False)
    assert a2.shape == (N, 1, H, W) and o2.shape == (N, Cl)
    assert jnp.allclose(a2.astype(jnp.float32), a2_ref, atol=4e-3, rtol=2e-2)
    assert jnp.allclose(o2, o2_ref, atol=5e-3, rtol=1e-2)

    print("KERNEL_OK")
</pallas_src>

<mosaic_0001>
module attributes {stable_mosaic.version = 11 : i64} {
  func.func @kernel(%arg0: i32, %arg1: memref<2x4x256xbf16, #tpu.memory_space<vmem>>, %arg2: memref<2x6x256xbf16, #tpu.memory_space<vmem>>, %arg3: memref<32x4xbf16, #tpu.memory_space<vmem>>, %arg4: memref<32x6xbf16, #tpu.memory_space<vmem>>, %arg5: memref<32x1xf32, #tpu.memory_space<vmem>>, %arg6: memref<1x1xf32, #tpu.memory_space<smem>>, %arg7: memref<2x256xbf16, #tpu.memory_space<vmem>>, %arg8: memref<2x4xf32, #tpu.memory_space<vmem>>) attributes {dimension_semantics = [#tpu.dimension_semantics<parallel>], iteration_bounds = array<i64: 1>, scalar_prefetch = 0 : i64, scratch_operands = 0 : i64, tpu.core_type = #tpu.core_type<tc>, window_params = [{transform_indices = @transform_0, window_bounds = array<i64: 2, 4, 256>}, {transform_indices = @transform_1, window_bounds = array<i64: 2, 6, 256>}, {pipeline_mode = #tpu.pipeline_mode<synchronous>, transform_indices = @transform_2, window_bounds = array<i64: 32, 4>}, {pipeline_mode = #tpu.pipeline_mode<synchronous>, transform_indices = @transform_3, window_bounds = array<i64: 32, 6>}, {pipeline_mode = #tpu.pipeline_mode<synchronous>, transform_indices = @transform_4, window_bounds = array<i64: 32, 1>}, {transform_indices = @transform_5, window_bounds = array<i64: 1, 1>}, {transform_indices = @transform_6, window_bounds = array<i64: 2, 256>}, {transform_indices = @transform_7, window_bounds = array<i64: 2, 4>}]} {
    %c0 = arith.constant 0 : index
    %c0_0 = arith.constant 0 : index
    %0 = vector.load %arg3[%c0, %c0_0] : memref<32x4xbf16, #tpu.memory_space<vmem>>, vector<32x4xbf16>
    %c0_1 = arith.constant 0 : index
    %c0_2 = arith.constant 0 : index
    %1 = vector.load %arg4[%c0_1, %c0_2] : memref<32x6xbf16, #tpu.memory_space<vmem>>, vector<32x6xbf16>
    %c0_3 = arith.constant 0 : index
    %c0_4 = arith.constant 0 : index
    %2 = vector.load %arg5[%c0_3, %c0_4] : memref<32x1xf32, #tpu.memory_space<vmem>>, vector<32x1xf32>
    %c0_5 = arith.constant 0 : index
    %c0_6 = arith.constant 0 : index
    %3 = memref.load %arg6[%c0_5, %c0_6] : memref<1x1xf32, #tpu.memory_space<smem>>
    %c0_i32 = arith.constant 0 : i32
    %4 = arith.index_cast %c0_i32 : i32 to index
    %c0_7 = arith.constant 0 : index
    %c0_8 = arith.constant 0 : index
    %5 = vector.load %arg1[%4, %c0_7, %c0_8] : memref<2x4x256xbf16, #tpu.memory_space<vmem>>, vector<1x4x256xbf16>
    %6 = vector.shape_cast %5 : vector<1x4x256xbf16> to vector<4x256xbf16>
    %7 = arith.index_cast %c0_i32 : i32 to index
    %c0_9 = arith.constant 0 : index
    %c0_10 = arith.constant 0 : index
    %8 = vector.load %arg2[%7, %c0_9, %c0_10] : memref<2x6x256xbf16, #tpu.memory_space<vmem>>, vector<1x6x256xbf16>
    %9 = vector.shape_cast %8 : vector<1x6x256xbf16> to vector<6x256xbf16>
    %cst = arith.constant dense<0.000000e+00> : vector<32x256xf32>
    %10 = tpu.matmul %0, %6, %cst {dimension_numbers = #tpu.dot_dimension_numbers<[1], [0], [0], [1], [0, 0, 1, 1], [], []>} : vector<32x4xbf16>, vector<4x256xbf16>, vector<32x256xf32> -> vector<32x256xf32>
    %cst_11 = arith.constant dense<0.000000e+00> : vector<32x256xf32>
    %11 = tpu.matmul %1, %9, %cst_11 {dimension_numbers = #tpu.dot_dimension_numbers<[1], [0], [0], [1], [0, 0, 1, 1], [], []>} : vector<32x6xbf16>, vector<6x256xbf16>, vector<32x256xf32> -> vector<32x256xf32>
    %12 = arith.addf %10, %11 : vector<32x256xf32>
    %cst_12 = arith.constant 0.000000e+00 : f32
    %13 = vector.broadcast %cst_12 : f32 to vector<32x256xf32>
    %14 = arith.maximumf %12, %13 : vector<32x256xf32>
    %15 = vector.broadcast %2 : vector<32x1xf32> to vector<32x256xf32>
    %16 = arith.mulf %14, %15 : vector<32x256xf32>
    %cst_13 = arith.constant dense<0.000000e+00> : vector<256xf32>
    %17 = vector.multi_reduction <add>, %16, %cst_13 [0] : vector<32x256xf32> to vector<256xf32>
    %18 = vector.shape_cast %17 : vector<256xf32> to vector<1x256xf32>
    %19 = vector.broadcast %3 : f32 to vector<1x256xf32>
    %20 = arith.addf %18, %19 : vector<1x256xf32>
    %21 = arith.extf %6 : vector<4x256xbf16> to vector<4x256xf32>
    %cst_14 = arith.constant dense<0xFF800000> : vector<1xf32>
    %22 = vector.multi_reduction <maximumf>, %20, %cst_14 [1] : vector<1x256xf32> to vector<1xf32>
    %23 = vector.shape_cast %22 : vector<1xf32> to vector<1x1xf32>
    %24 = vector.broadcast %23 : vector<1x1xf32> to vector<1x256xf32>
    %25 = arith.subf %20, %24 : vector<1x256xf32>
    %26 = math.exp %25 : vector<1x256xf32>
    %cst_15 = arith.constant dense<0.000000e+00> : vector<1xf32>
    %27 = vector.multi_reduction <add>, %26, %cst_15 [1] : vector<1x256xf32> to vector<1xf32>
    %28 = vector.shape_cast %27 : vector<1xf32> to vector<1x1xf32>
    %29 = tpu.reciprocal %28 {approx = true} : vector<1x1xf32> -> vector<1x1xf32>
    %30 = vector.broadcast %29 : vector<1x1xf32> to vector<1x256xf32>
    %31 = arith.mulf %26, %30 : vector<1x256xf32>
    %32 = vector.broadcast %31 : vector<1x256xf32> to vector<4x256xf32>
    %33 = arith.mulf %32, %21 : vector<4x256xf32>
    %cst_16 = arith.constant dense<0.000000e+00> : vector<4xf32>
    %34 = vector.multi_reduction <add>, %33, %cst_16 [1] : vector<4x256xf32> to vector<4xf32>
    %35 = arith.truncf %31 : vector<1x256xf32> to vector<1x256xbf16>
    %36 = arith.index_cast %c0_i32 : i32 to index
    %c0_17 = arith.constant 0 : index
    %37 = vector.load %arg7[%36, %c0_17] : memref<2x256xbf16, #tpu.memory_space<vmem>>, vector<1x256xbf16>
    tpu.vector_store %arg7[%36, %c0_17], %35 {strides = array<i32>} : memref<2x256xbf16, #tpu.memory_space<vmem>>, vector<1x256xbf16>,
    %38 = vector.shape_cast %34 : vector<4xf32> to vector<1x4xf32>
    %39 = arith.index_cast %c0_i32 : i32 to index
    %c0_18 = arith.constant 0 : index
    %40 = vector.load %arg8[%39, %c0_18] : memref<2x4xf32, #tpu.memory_space<vmem>>, vector<1x4xf32>
    tpu.vector_store %arg8[%39, %c0_18], %38 {strides = array<i32>} : memref<2x4xf32, #tpu.memory_space<vmem>>, vector<1x4xf32>,
    %c1_i32 = arith.constant 1 : i32
    %41 = arith.index_cast %c1_i32 : i32 to index
    %c0_19 = arith.constant 0 : index
    %c0_20 = arith.constant 0 : index
    %42 = vector.load %arg1[%41, %c0_19, %c0_20] : memref<2x4x256xbf16, #tpu.memory_space<vmem>>, vector<1x4x256xbf16>
    %43 = vector.shape_cast %42 : vector<1x4x256xbf16> to vector<4x256xbf16>
    %44 = arith.index_cast %c1_i32 : i32 to index
    %c0_21 = arith.constant 0 : index
    %c0_22 = arith.constant 0 : index
    %45 = vector.load %arg2[%44, %c0_21, %c0_22] : memref<2x6x256xbf16, #tpu.memory_space<vmem>>, vector<1x6x256xbf16>
    %46 = vector.shape_cast %45 : vector<1x6x256xbf16> to vector<6x256xbf16>
    %cst_23 = arith.constant dense<0.000000e+00> : vector<32x256xf32>
    %47 = tpu.matmul %0, %43, %cst_23 {dimension_numbers = #tpu.dot_dimension_numbers<[1], [0], [0], [1], [0, 0, 1, 1], [], []>} : vector<32x4xbf16>, vector<4x256xbf16>, vector<32x256xf32> -> vector<32x256xf32>
    %cst_24 = arith.constant dense<0.000000e+00> : vector<32x256xf32>
    %48 = tpu.matmul %1, %46, %cst_24 {dimension_numbers = #tpu.dot_dimension_numbers<[1], [0], [0], [1], [0, 0, 1, 1], [], []>} : vector<32x6xbf16>, vector<6x256xbf16>, vector<32x256xf32> -> vector<32x256xf32>
    %49 = arith.addf %47, %48 : vector<32x256xf32>
    %cst_25 = arith.constant 0.000000e+00 : f32
    %50 = vector.broadcast %cst_25 : f32 to vector<32x256xf32>
    %51 = arith.maximumf %49, %50 : vector<32x256xf32>
    %52 = vector.broadcast %2 : vector<32x1xf32> to vector<32x256xf32>
    %53 = arith.mulf %51, %52 : vector<32x256xf32>
    %cst_26 = arith.constant dense<0.000000e+00> : vector<256xf32>
    %54 = vector.multi_reduction <add>, %53, %cst_26 [0] : vector<32x256xf32> to vector<256xf32>
    %55 = vector.shape_cast %54 : vector<256xf32> to vector<1x256xf32>
    %56 = vector.broadcast %3 : f32 to vector<1x256xf32>
    %57 = arith.addf %55, %56 : vector<1x256xf32>
    %58 = arith.extf %43 : vector<4x256xbf16> to vector<4x256xf32>
    %cst_27 = arith.constant dense<0xFF800000> : vector<1xf32>
    %59 = vector.multi_reduction <maximumf>, %57, %cst_27 [1] : vector<1x256xf32> to vector<1xf32>
    %60 = vector.shape_cast %59 : vector<1xf32> to vector<1x1xf32>
    %61 = vector.broadcast %60 : vector<1x1xf32> to vector<1x256xf32>
    %62 = arith.subf %57, %61 : vector<1x256xf32>
    %63 = math.exp %62 : vector<1x256xf32>
    %cst_28 = arith.constant dense<0.000000e+00> : vector<1xf32>
    %64 = vector.multi_reduction <add>, %63, %cst_28 [1] : vector<1x256xf32> to vector<1xf32>
    %65 = vector.shape_cast %64 : vector<1xf32> to vector<1x1xf32>
    %66 = tpu.reciprocal %65 {approx = true} : vector<1x1xf32> -> vector<1x1xf32>
    %67 = vector.broadcast %66 : vector<1x1xf32> to vector<1x256xf32>
    %68 = arith.mulf %63, %67 : vector<1x256xf32>
    %69 = vector.broadcast %68 : vector<1x256xf32> to vector<4x256xf32>
    %70 = arith.mulf %69, %58 : vector<4x256xf32>
    %cst_29 = arith.constant dense<0.000000e+00> : vector<4xf32>
    %71 = vector.multi_reduction <add>, %70, %cst_29 [1] : vector<4x256xf32> to vector<4xf32>
    %72 = arith.truncf %68 : vector<1x256xf32> to vector<1x256xbf16>
    %73 = arith.index_cast %c1_i32 : i32 to index
    %c0_30 = arith.constant 0 : index
    %74 = vector.load %arg7[%73, %c0_30] : memref<2x256xbf16, #tpu.memory_space<vmem>>, vector<1x256xbf16>
    tpu.vector_store %arg7[%73, %c0_30], %72 {strides = array<i32>} : memref<2x256xbf16, #tpu.memory_space<vmem>>, vector<1x256xbf16>,
    %75 = vector.shape_cast %71 : vector<4xf32> to vector<1x4xf32>
    %76 = arith.index_cast %c1_i32 : i32 to index
    %c0_31 = arith.constant 0 : index
    %77 = vector.load %arg8[%76, %c0_31] : memref<2x4xf32, #tpu.memory_space<vmem>>, vector<1x4xf32>
    tpu.vector_store %arg8[%76, %c0_31], %75 {strides = array<i32>} : memref<2x4xf32, #tpu.memory_space<vmem>>, vector<1x4xf32>,
    %c2_i32 = arith.constant 2 : i32
    return
  }
  func.func @transform_0(%arg0: i32) -> (i32, i32, i32) {
    %c0_i32 = arith.constant 0 : i32
    %c0_i32_0 = arith.constant 0 : i32
    %c0_i32_1 = arith.constant 0 : i32
    return %arg0, %c0_i32, %c0_i32_0 : i32, i32, i32
  }
  func.func @transform_1(%arg0: i32) -> (i32, i32, i32) {
    %c0_i32 = arith.constant 0 : i32
    %c0_i32_0 = arith.constant 0 : i32
    %c0_i32_1 = arith.constant 0 : i32
    return %arg0, %c0_i32, %c0_i32_0 : i32, i32, i32
  }
  func.func @transform_2(%arg0: i32) -> (i32, i32) {
    %c0_i32 = arith.constant 0 : i32
    %c0_i32_0 = arith.constant 0 : i32
    %c0_i32_1 = arith.constant 0 : i32
    return %c0_i32, %c0_i32_0 : i32, i32
  }
  func.func @transform_3(%arg0: i32) -> (i32, i32) {
    %c0_i32 = arith.constant 0 : i32
    %c0_i32_0 = arith.constant 0 : i32
    %c0_i32_1 = arith.constant 0 : i32
    return %c0_i32, %c0_i32_0 : i32, i32
  }
  func.func @transform_4(%arg0: i32) -> (i32, i32) {
    %c0_i32 = arith.constant 0 : i32
    %c0_i32_0 = arith.constant 0 : i32
    %c0_i32_1 = arith.constant 0 : i32
    return %c0_i32, %c0_i32_0 : i32, i32
  }
  func.func @transform_5(%arg0: i32) -> (i32, i32) {
    %c0_i32 = arith.constant 0 : i32
    %c0_i32_0 = arith.constant 0 : i32
    %c0_i32_1 = arith.constant 0 : i32
    return %c0_i32, %c0_i32_0 : i32, i32
  }
  func.func @transform_6(%arg0: i32) -> (i32, i32) {
    %c0_i32 = arith.constant 0 : i32
    %c0_i32_0 = arith.constant 0 : i32
    return %arg0, %c0_i32 : i32, i32
  }
  func.func @transform_7(%arg0: i32) -> (i32, i32) {
    %c0_i32 = arith.constant 0 : i32
    %c0_i32_0 = arith.constant 0 : i32
    return %arg0, %c0_i32 : i32, i32
  }
}

</mosaic_0001>

<bundles_post_ra>
// kernel: tpu_custom_call.1
= control target key start
LH: loop header
LB: loop body
LE: loop exit
PB: predicated region body
PF: predicated region fallthrough
CT: control target
= control target key end

     0   :  { %14 = vsyncpa [#allocation4], 0  ;;  %vm66_vm0 = vcmask 1042432   ;;  %v140_v2 = vlaneseq  ;;  %v715_v7 = vmov 0   ;;  %v716_v11 = vmov 1983009808   ;;  %s862_s0 = inlined_call_operand.vmem [shape: bf16[2,4,256], index: 0, kind: input, shape index: {}]   ;;  %s863_s1 = inlined_call_operand.vmem [shape: bf16[2,6,256], index: 1, kind: input, shape index: {}]   ;;  %s864_s2 = inlined_call_operand.vmem [shape: bf16[32,4], index: 2, kind: input, shape index: {}]   ;;  %s865_s3 = inlined_call_operand.vmem [shape: bf16[32,6], index: 3, kind: input, shape index: {}]   ;;  %s866_s4 = inlined_call_operand.vmem [shape: f32[32,1], index: 4, kind: input, shape index: {}]   ;;  %s867_s5 = inlined_call_operand.<no memory space> [shape: f32[1,1], index: 5, kind: input, shape index: {}]   ;;  %s868_s6 = inlined_call_operand.hbm [shape: bf16[2,256], index: 6, kind: output, shape index: {0}]   ;;  %s869_s7 = inlined_call_operand.hbm [shape: f32[2,4], index: 7, kind: output, shape index: {1}]  }
   0x1   :  { %v43_v0 = vld [vmem:[%s863_s1] sm:$0x77]  ;;  %v614_v1 = vld [vmem:[%s863_s1 + $0x8] sm:$0x77]  ;;  %105 = vmatprep.mubr.bf16.mxu0 %v715_v7  ;;  %383 = vmatprep.mubr.bf16.mxu1 %v715_v7  ;;  %v138_v12 = vunpack.c.l.s4 %v716_v11  ;;  %vm59_vm1 = vcmask 48128   ;;  %v39_v19 = vld [vmem:[%s866_s4 + $0x10] sm:$0xff] }
   0x2   :  { %v603_v3 = vcombine.high %v43_v0, %v43_v0  ;;  %v616_v4 = vcombine.high %v614_v1, %v614_v1  ;;  %v602_v5 = vcombine.low %v43_v0, %v43_v0  ;;  %v615_v6 = vcombine.low %v614_v1, %v614_v1  ;;  %645 = vset.pattern.permute.xlu0 %v715_v7  ;;  %v651_v10 = vld [vmem:[%s865_s3] sm:$0xff]  }
   0x3   :  { %v770_v13 = vshrl.u32 %v140_v2, 7  ;;  %v775_v14 = vld [vmem:[%s862_s0] sm:$0xf]  ;;  %v139_v15 = vunpack.c.0.s8 %v138_v12  ;;  %646 = vset.pattern.permute.xlu1 %v715_v7  ;;  %v780_v16 = vld [vmem:[%s862_s0 + $0x4] sm:$0xf]  ;;  %vm152_vm2 = vcmask 1041408  }
   0x4   :  { %604 = vmatprep.subr.msk.bf16.mxu0 %vm66_vm0, %v603_v3  ;;  %617 = vmatprep.subr.msk.bf16.mxu1 %vm66_vm0, %v616_v4  ;;  %v68_v8 = vsel %vm66_vm0, %v602_v5, 0  ;;  %v346_v9 = vsel %vm66_vm0, %v615_v6, 0  ;;  %v37_v17 = vld [vmem:[%s866_s4] sm:$0xff] }
   0x5   :  { %74 = vmatpush1.bf16.msra.mxu0 %v68_v8  ;;  %352 = vmatpush1.bf16.msra.mxu1 %v346_v9  ;;  %v142_v18 = vsub.s32 %v139_v15, %v770_v13 }
   0x8   :  { %605 = vmatmul.mubr.msk.bf16.vlgmr.msra.gmra.mrb[0].mxu0 %vm59_vm1, %v651_v10  ;;  %618 = vmatmul.mubr.msk.bf16.vlgmr.msra.gmra.mrb[0].mxu1 %vm59_vm1, %v651_v10 }
   0x9   :  { %115 = vmatprep.mubr.bf16.mxu0 %v715_v7  ;;  %393 = vmatprep.mubr.bf16.mxu1 %v715_v7 }
   0xa   :  { %15 = vsyncpa [#allocation6], 0  ;;  %v143_v20 = vrot.slane %v775_v14, %v142_v18  ;;  %v411_v21 = vrot.slane %v780_v16, %v142_v18  ;;  %222 = vperm.xlu0 %645, %v37_v17   ;;  %232 = vperm.xlu1 %646, %v39_v19   ;;  %v652_v24 = vld [vmem:[%s865_s3 + $0x8] sm:$0xff]   ;;  %v40_v28 = vld [vmem:[%s866_s4 + $0x18] sm:$0xff]  ;;  %vm145_vm3 = vcmask 31744   ;;  %vm316_vm4 = vcmask 1040384  }
   0xb   :  { %v38_v27 = vld [vmem:[%s866_s4 + $0x8] sm:$0xff]  ;;  %v653_v29 = vld [vmem:[%s864_s2] sm:$0xff]   ;;  %vm317_vm5 = vsmask.f32 256  ;;  %vm319_vm6 = vcmask 1041409   ;;  %vm290_vm8 = vcmask 1043456  }
   0xc   :  { %v144_v22 = vcombine.high %v143_v20, %v143_v20  ;;  %v154_v23 = vsel %vm152_vm2, %v143_v20, 0  ;;  %v412_v25 = vcombine.high %v411_v21, %v411_v21  ;;  %v414_v26 = vsel %vm152_vm2, %v411_v21, 0  ;;  %v654_v30 = vld [vmem:[%s864_s2 + $0x8] sm:$0xff]   ;;  %vm817_vm9 = vmand %vm316_vm4, %vm317_vm5 }
   0xd   :  { %vm320_vm7 = vsmask.f32 1280  ;;  %vm557_vm12 = vsmask.f32 7938  ;;  %vm559_vm13 = vsmask.f32 7942 }
   0xe   :  { %609 = vmatprep.subr.msk.bf16.mxu0 %vm152_vm2, %v144_v22  ;;  %620 = vmatprep.subr.msk.bf16.mxu1 %vm152_vm2, %v412_v25  ;;  %vm822_vm10 = vmand %vm319_vm6, %vm320_vm7 }
   0xf   :  { %160 = vmatpush1.bf16.msra.mxu0 %v154_v23  ;;  %420 = vmatpush1.bf16.msra.mxu1 %v414_v26  ;;  %vm322_vm11 = vmor %vm822_vm10, %vm817_vm9 }
  0x10   :  { %606 = vmatmul.mubr.msk.bf16.gmra.mrb[4].mxu0 %vm59_vm1, %v652_v24  ;;  %619 = vmatmul.mubr.msk.bf16.gmra.mrb[4].mxu1 %vm59_vm1, %v652_v24  ;;  %vm558_vm14 = vmand %vm316_vm4, %vm557_vm12 }
  0x11   :  { %191 = vmatprep.mubr.bf16.mxu0 %v715_v7  ;;  %451 = vmatprep.mubr.bf16.mxu1 %v715_v7  ;;  %vm560_vm15 = vmand %vm319_vm6, %vm559_vm13 }
  0x12   :  { %227 = vperm.xlu0 %645, %v38_v27   ;;  %237 = vperm.xlu1 %646, %v40_v28   ;;  %vm561_vm0 = vmor %vm560_vm15, %vm558_vm14 }
  0x18   :  { %610 = vmatmul.mubr.msk.bf16.vlgmr.msra.gmra.mrb[0].mxu0 %vm145_vm3, %v653_v29  ;;  %621 = vmatmul.mubr.msk.bf16.vlgmr.msra.gmra.mrb[0].mxu1 %vm145_vm3, %v653_v29 }
  0x19   :  { %201 = vmatprep.mubr.bf16.mxu0 %v715_v7  ;;  %461 = vmatprep.mubr.bf16.mxu1 %v715_v7 }
  0x20   :  { %611 = vmatmul.mubr.msk.bf16.gmra.mrb[4].mxu0 %vm145_vm3, %v654_v30  ;;  %622 = vmatmul.mubr.msk.bf16.gmra.mrb[4].mxu1 %vm145_vm3, %v654_v30 }
  0x89   :  { %v223_v31 = vpop.permute.xlu0 %222  ;;  %v233_v57 = vpop.permute.xlu1 %232 }
  0x91   :  { %v228_v32 = vpop.permute.xlu0 %227  ;;  %v238_v22 = vpop.permute.xlu1 %237 }
  0xeb   :  { %v193_v33 = vpop.f32.mrb[0].mxu0  ;;  %v453_v34 = vpop.f32.mrb[0].mxu1 }
  0xec   :  { %v212_v35 = vmax.f32 %v193_v33, 0.0  ;;  %v472_v36 = vmax.f32 %v453_v34, 0.0  ;;  %v195_v37 = vpop.f32.mrb[1].mxu0  ;;  %v455_v38 = vpop.f32.mrb[1].mxu1 }
  0xed   :  { %v213_v39 = vmax.f32 %v195_v37, 0.0  ;;  %v473_v40 = vmax.f32 %v455_v38, 0.0  ;;  %v197_v41 = vpop.f32.mrb[2].mxu0  ;;  %v457_v42 = vpop.f32.mrb[2].mxu1 }
  0xee   :  { %v214_v43 = vmax.f32 %v197_v41, 0.0  ;;  %v474_v44 = vmax.f32 %v457_v42, 0.0  ;;  %v199_v45 = vpop.f32.mrb[3].mxu0  ;;  %v459_v46 = vpop.f32.mrb[3].mxu1  ;;  %v240_v49 = vmul.f32 %v223_v31, %v212_v35  ;;  %v480_v50 = vmul.f32 %v472_v36, %v223_v31 }
  0xef   :  { %v215_v47 = vmax.f32 %v199_v45, 0.0  ;;  %v475_v48 = vmax.f32 %v459_v46, 0.0  ;;  %v241_v53 = vmul.f32 %v223_v31, %v213_v39  ;;  %v481_v54 = vmul.f32 %v473_v40, %v223_v31 }
  0xf0   :  { %v242_v51 = vmul.f32 %v228_v32, %v214_v43  ;;  %v482_v52 = vmul.f32 %v474_v44, %v228_v32 }
  0xf1   :  { %v243_v55 = vmul.f32 %v228_v32, %v215_v47  ;;  %v483_v56 = vmul.f32 %v475_v48, %v228_v32 }
  0xf2   :  { %v248_v58 = vadd.f32 %v242_v51, %v240_v49  ;;  %v488_v59 = vadd.f32 %v482_v52, %v480_v50 }
  0xf3   :  { %v203_v60 = vpop.f32.mrb[4].mxu0  ;;  %v463_v61 = vpop.f32.mrb[4].mxu1  ;;  %v257_v62 = vadd.f32 %v243_v55, %v241_v53  ;;  %v497_v63 = vadd.f32 %v483_v56, %v481_v54  ;;  %v266_v53 = vstv %s867_s5  ;;  %s718_s5 = smov [#allocation3]  }
  0xf4   :  { %v216_v0 = vmax.f32 %v203_v60, 0.0  ;;  %v476_v1 = vmax.f32 %v463_v61, 0.0  ;;  %v205_v3 = vpop.f32.mrb[5].mxu0  ;;  %v465_v4 = vpop.f32.mrb[5].mxu1  ;;  %s578_s22 = sshll.u32 %s718_s5, 4  ;;  %s579_s22 = int_to_ptr.vmem [resolvable:$true] %s578_s22 }
  0xf5   :  { %v217_v5 = vmax.f32 %v205_v3, 0.0  ;;  %v477_v6 = vmax.f32 %v465_v4, 0.0  ;;  %v207_v7 = vpop.f32.mrb[6].mxu0  ;;  %v467_v8 = vpop.f32.mrb[6].mxu1  ;;  %s667_s23 = scalar_lea.vmem %s579_s22, 32  ;;  %p672_p1 = scmp.lt.s32.totalorder %s579_s22, %s579_s22 }
  0xf6   :  { %v244_v9 = vmul.f32 %v233_v57, %v216_v0  ;;  %v484_v10 = vmul.f32 %v476_v1, %v233_v57  ;;  %v218_v11 = vmax.f32 %v207_v7, 0.0  ;;  %v478_v12 = vmax.f32 %v467_v8, 0.0  ;;  %v209_v15 = vpop.f32.mrb[7].mxu0  ;;  %v469_v17 = vpop.f32.mrb[7].mxu1  ;;  %p668_p0 = scmp.ne.s32.totalorder %s579_s22, %s667_s23  ;;  %p673_p2 = scmp.lt.s32.totalorder %s667_s23, %s667_s23 }
  0xf7   :  { %v245_v18 = vmul.f32 %v233_v57, %v217_v5  ;;  %v485_v19 = vmul.f32 %v477_v6, %v233_v57  ;;  %v219_v20 = vmax.f32 %v209_v15, 0.0  ;;  %v479_v21 = vmax.f32 %v469_v17, 0.0 }
  0xf8   :  { %v249_v23 = vadd.f32 %v248_v58, %v244_v9  ;;  %v489_v24 = vadd.f32 %v488_v59, %v484_v10  ;;  %v246_v25 = vmul.f32 %v238_v22, %v218_v11  ;;  %v486_v26 = vmul.f32 %v478_v12, %v238_v22  ;;  %p674_p3 = por %p673_p2, %p672_p1 }
  0xf9   :  { %v258_v27 = vadd.f32 %v257_v62, %v245_v18  ;;  %v498_v28 = vadd.f32 %v497_v63, %v485_v19  ;;  %v247_v29 = vmul.f32 %v238_v22, %v219_v20  ;;  %v487_v30 = vmul.f32 %v479_v21, %v238_v22 }
  0xfa   :  { %v250_v31 = vadd.f32 %v249_v23, %v246_v25  ;;  %v490_v32 = vadd.f32 %v489_v24, %v486_v26  ;;  %v717_v24 = vmov 1966171168   ;;  %v269_v26 = vunpack.c.l.bf16 %v775_v14  ;;  %p675_p4 = pnand %p674_p3, %p668_p0 }
  0xfb   :  { %v259_v33 = vadd.f32 %v258_v27, %v247_v29  ;;  %v499_v34 = vadd.f32 %v498_v28, %v487_v30  ;;  %v302_v25 = vunpack.c.l.s4 %v717_v24  ;;  %v508_v30 = vunpack.c.l.bf16 %v780_v16 }
  0xfc   :  { %v251_v35 = vrot.slane %v250_v31, 4  ;;  %v491_v36 = vrot.slane %v490_v32, 4  ;;  %v286_v28 = vcombine.high %v269_v26, %v269_v26 }
  0xfd   :  { %v260_v37 = vrot.slane %v259_v33, 4  ;;  %v500_v38 = vrot.slane %v499_v34, 4  ;;  %v303_v27 = vunpack.c.0.s8 %v302_v25 }
  0xfe   :  { %v492_v39 = vadd.f32 %v491_v36, %v490_v32  ;;  %v252_v40 = vadd.f32 %v251_v35, %v250_v31 }
  0xff   :  { %v501_v41 = vadd.f32 %v500_v38, %v499_v34  ;;  %v261_v42 = vadd.f32 %v260_v37, %v259_v33  ;;  %v306_v33 = vsub.s32 %v303_v27, %v770_v13  ;;  %v525_v38 = vcombine.high %v508_v30, %v508_v30 }
 0x100   :  { %v493_v43 = vrot.slane %v492_v39, 2  ;;  %v253_v44 = vrot.slane %v252_v40, 2 }
 0x101   :  { %v502_v45 = vrot.slane %v501_v41, 2  ;;  %v262_v46 = vrot.slane %v261_v42, 2 }
 0x102   :  { %v494_v47 = vadd.f32 %v493_v43, %v492_v39  ;;  %v254_v48 = vadd.f32 %v253_v44, %v252_v40 }
 0x103   :  { %v503_v49 = vadd.f32 %v502_v45, %v501_v41  ;;  %v263_v50 = vadd.f32 %v262_v46, %v261_v42  ;;  %v323_v45 = vld [vmem:[#allocation3] sm:$0x3] }
 0x104   :  { %v495_v51 = vrot.slane %v494_v47, 1  ;;  %v255_v52 = vrot.slane %v254_v48, 1 }
 0x105   :  { %v504_v54 = vrot.slane %v503_v49, 1  ;;  %v264_v55 = vrot.slane %v263_v50, 1 }
 0x106   :  { %v496_v56 = vadd.f32 %v495_v51, %v494_v47  ;;  %v256_v57 = vadd.f32 %v255_v52, %v254_v48 }
 0x107   :  { %v505_v58 = vadd.f32 %v504_v54, %v503_v49  ;;  %v265_v59 = vadd.f32 %v264_v55, %v263_v50 }
 0x108   :  { %v506_v60 = vadd.f32 %v496_v56, %v266_v53  ;;  %v267_v61 = vadd.f32 %v266_v53, %v256_v57 }
 0x109   :  { %v507_v62 = vadd.f32 %v505_v58, %v266_v53  ;;  %v268_v63 = vadd.f32 %v266_v53, %v265_v59 }
 0x10b   :  { %v509_v0 = vmax.f32 %v506_v60, %v507_v62  ;;  %v270_v1 = vmax.f32 %v267_v61, %v268_v63 }
 0x10d   :  { %510 = vmax.xlane.f32.xlu1 %v509_v0  ;;  %271 = vmax.xlane.f32.xlu0 %v270_v1 }
 0x19a   :  { %v511_v3 = vpop.xlane.xlu1 %510  ;;  %v272_v4 = vpop.xlane.xlu0 %271 }
 0x19b   :  { %v512_v5 = vsub.f32 %v506_v60, %v511_v3  ;;  %v273_v6 = vsub.f32 %v267_v61, %v272_v4  ;;  %v274_v7 = vsub.f32 %v268_v63, %v272_v4  ;;  %v513_v8 = vsub.f32 %v507_v62, %v511_v3 }
 0x19d   :  { %v275_v9 = vmul.f32 1.442695, %v273_v6  ;;  %v277_v10 = vmul.f32 1.442695, %v274_v7  ;;  %v514_v11 = vmul.f32 1.442695, %v512_v5 }
 0x19e   :  { %v516_v12 = vmul.f32 1.442695, %v513_v8 }
 0x19f   :  { %655 = vpow2.f32 %v275_v9 }
 0x1a0   :  { %657 = vpow2.f32 %v277_v10 }
 0x1a1   :  { %659 = vpow2.f32 %v514_v11 }
 0x1a2   :  { %661 = vpow2.f32 %v516_v12 }
 0x1a9   :  { %v656_v15 = vpop.eup %655 }
 0x1aa   :  { %v658_v17 = vpop.eup %657 }
 0x1ab   :  { %v660_v18 = vpop.eup %659  ;;  %v279_v19 = vadd.f32 %v658_v17, %v656_v15 }
 0x1ac   :  { %v662_v20 = vpop.eup %661 }
 0x1ad   :  { %280 = vadd.xlane.f32.xlu0 %v279_v19  ;;  %v518_v21 = vadd.f32 %v662_v20, %v660_v18 }
 0x1b1   :  { %519 = vadd.xlane.f32.xlu0 %v518_v21 }
 0x23a   :  { %v281_v22 = vpop.xlane.xlu0 %280 }
 0x23b   :  { %663 = vrcp.f32 %v281_v22 }
 0x23e   :  { %v520_v23 = vpop.xlane.xlu0 %519 }
 0x23f   :  { %665 = vrcp.f32 %v520_v23 }
 0x245   :  { %v664_v29 = vpop.eup %663 }
 0x246   :  { %v283_v31 = vmul.f32 %v664_v29, %v656_v15  ;;  %v284_v32 = vmul.f32 %v664_v29, %v658_v17 }
 0x248   :  { %v288_v14 = vmul.f32 %v283_v31, %v269_v26  ;;  %v289_v35 = vmul.f32 %v286_v28, %v284_v32  ;;  %v612_v36 = vpack.c.bf16 %v284_v32, %v283_v31 }
 0x249   :  { %v666_v16 = vpop.eup %665 }
 0x24a   :  { %v291_v39 = vsel %vm290_vm8, %v288_v14, 0.0  ;;  %v292_v40 = vsel %vm290_vm8, %v289_v35, 0.0  ;;  %v307_v41 = vrot.slane %v612_v36, %v306_v33  ;;  %v522_v42 = vmul.f32 %v666_v16, %v660_v18 }
 0x24b   :  { %v293_v43 = vadd.f32 %v292_v40, %v291_v39  ;;  %v523_v44 = vmul.f32 %v666_v16, %v662_v20 }
 0x24c   :  { %v527_v46 = vmul.f32 %v522_v42, %v508_v30  ;;  %v314_v47 = vrot.slane %v307_v41, %v306_v33 }
 0x24d   :  { %294 = vadd.xlane.f32.xlu1 %v293_v43  ;;  %v528_v48 = vmul.f32 %v525_v38, %v523_v44  ;;  %v623_v49 = vpack.c.bf16 %v523_v44, %v522_v42 }
 0x24e   :  { %v529_v50 = vsel %vm290_vm8, %v527_v46, 0.0  ;;  %v324_v51 = vsel %vm322_vm11, %v314_v47, %v323_v45 }
 0x24f   :  { %v530_v52 = vsel %vm290_vm8, %v528_v48, 0.0  ;;  %v545_v53 = vrot.slane %v623_v49, %v306_v33  ;;  %325 = vst [vmem:[#allocation3] sm:$0x3] %v324_v51 }
 0x250   :  { %v531_v54 = vadd.f32 %v530_v52, %v529_v50 }
 0x251   :  { %v552_v55 = vrot.slane %v545_v53, %v306_v33 }
 0x252   :  { %532 = vadd.xlane.f32.xlu0 %v531_v54 }
 0x253   :  { %v554_v56 = vshll.u32 %v552_v55, 16 }
 0x256   :  { %v562_v57 = vld [vmem:[#allocation3] sm:$0x3] }
 0x257   :  { %v563_v58 = vsel %vm561_vm0, %v554_v56, %v562_v57 }
 0x258   :  { %564 = vst [vmem:[#allocation3] sm:$0x3] %v563_v58 }
 0x259   :  { %678 = shalt.err (!%p675_p4)
}
 0x25a   :  { %s679_s26 = scalar_lea.hbm %s868_s6, 32 }
 0x25b   :  { %p680_p5 = scmp.ne.s32.totalorder %s868_s6, %s679_s26  ;;  %p683_p6 = scmp.lt.u32.totalorder %s679_s26, %s868_s6 }
 0x25d   :  { %p685_p7 = pnand %p683_p6, %p680_p5 }
 0x25f   :  { %688 = shalt.err (!%p685_p7)
}
 0x260   :  { %581 = dma.vmem_to_hbm [thread:$0]  %s579_s22, 32, %s868_s6, [#allocation4]   ;;  %v328_v59 = vand.u32 127, %v140_v2  ;;  %vm334_vm1 = vcmask 24576  }
 0x261   :  { %s719_s9 = smov [#allocation5]  }
 0x262   :  { %v331_v60 = vsub.s32 %v328_v59, %v770_v13  ;;  %s588_s10 = sshll.u32 %s719_s9, 4  ;;  %s589_s10 = int_to_ptr.vmem [resolvable:$true] %s588_s10 }
 0x263   :  { %s689_s11 = scalar_lea.vmem %s589_s10, 32  ;;  %p694_p9 = scmp.lt.s32.totalorder %s589_s10, %s589_s10 }
 0x264   :  { %p690_p8 = scmp.ne.s32.totalorder %s589_s10, %s689_s11  ;;  %p695_p10 = scmp.lt.s32.totalorder %s689_s11, %s689_s11 }
 0x266   :  { %p696_p11 = por %p695_p10, %p694_p9 }
 0x268   :  { %p697_p12 = pnand %p696_p11, %p690_p8 }
 0x2da   :  { %v295_v61 = vpop.xlane.xlu1 %294 }
 0x2db   :  { %v332_v62 = vrot.slane %v295_v61, %v331_v60 }
 0x2dd   :  { %335 = vst.msk [vmem:[#allocation5] sm:$0x1] %vm334_vm1, %v332_v62 }
 0x2df   :  { %v533_v63 = vpop.xlane.xlu0 %532 }
 0x2e0   :  { %v569_v0 = vrot.slane %v533_v63, %v331_v60 }
 0x2e2   :  { %571 = vst.msk [vmem:[#allocation5 + $0x1] sm:$0x1] %vm334_vm1, %v569_v0 }
 0x2e3   :  { %700 = shalt.err (!%p697_p12)
}
 0x2e4   :  { %s701_s13 = scalar_lea.hbm %s869_s7, 32 }
 0x2e5   :  { %p702_p13 = scmp.ne.s32.totalorder %s869_s7, %s701_s13  ;;  %p705_p0 = scmp.lt.u32.totalorder %s701_s13, %s869_s7 }
 0x2e7   :  { %p707_p1 = pnand %p705_p0, %p702_p13 }
 0x2e9   :  { %710 = shalt.err (!%p707_p1)
}
 0x2ea   :  { %591 = dma.vmem_to_hbm [thread:$0]  %s589_s10, 32, %s869_s7, [#allocation6]  }
 0x2eb   :  { %711 = dma.done.wait [#allocation4], 32  }
 0x2ec   :  { %712 = vsyncadd [#allocation4], 4294967264 }
 0x2ed   :  { %713 = dma.done.wait [#allocation6], 32  }
 0x2ee   :  { %714 = vsyncadd [#allocation6], 4294967264 }
 0x2ef   :  { %598 = vsyncpa [#allocation4], 1 }
 0x2f0   :  { %599 = vsyncpa [#allocation6], 1 }

</bundles_post_ra>
